<compile_context>
chip_gen: v7x
topology: tpu7x:2x2x1
jax: 0.10.0
libtpu: 0.0.40
codegen_flags: <defaults>
</compile_context>

<pallas_src>
import jax
import jax.numpy as jnp
from jax.experimental import pallas as pl
from jax.experimental.pallas import tpu as pltpu

NUM_COLORS = 7
NUM_POS = 7
NUM_CHEMICAL_LAYERS = 4  # sequence length fed to the LSTM (global in the original repo)

POS_EMB_DIM = 20
COLOR_EMB_DIM = 20
HIDDEN_DIM = 10


def _round_up(x, m):
    return ((x + m - 1) // m) * m


# ----------------------------------------------------------------------------
# Pallas kernel: single-layer LSTM over the chemical layers, returns final h.
#   idx_ref   : (Nb, L)  int32 color indices
#   table_ref : (NUM_COLORS, 4H) f32  == color_emb @ Wih_fused + (b_ih + b_hh)
#   whh_ref   : (H, 4H) f32 fused recurrent weight
#   hout_ref  : (Nb, H) f32 final hidden state
# Fused gate column order is [i, f, o, g]  (sigmoid gates contiguous).
# ----------------------------------------------------------------------------
def _lstm_kernel(idx_ref, table_ref, whh_ref, hout_ref):
    Nb, L = idx_ref.shape
    H = whh_ref.shape[0]
    NC = table_ref.shape[0]

    idx = idx_ref[...]                     # (Nb, L) int32
    table = table_ref[...]                 # (NC, 4H)
    whh = whh_ref[...]                     # (H, 4H)

    h = jnp.zeros((Nb, H), jnp.float32)
    c = jnp.zeros((Nb, H), jnp.float32)

    # Column iota used to build the one-hot color selector (embedding gather
    # expressed as an MXU-friendly matmul). Hoisted out of the time loop.
    col = jax.lax.broadcasted_iota(jnp.int32, (Nb, NC), dimension=1)

    # L is tiny and static -> unroll the recurrence.
    for t in range(L):
        idx_t = idx[:, t : t + 1]                              # (Nb, 1)
        onehot = (idx_t == col).astype(jnp.float32)            # (Nb, NC)

        # One fused input projection (embedding + Wih + bias, folded into the
        # table) and one fused recurrent matmul per step.
        z = (
            jnp.dot(onehot, table, preferred_element_type=jnp.float32)
            + jnp.dot(h, whh, preferred_element_type=jnp.float32)
        )                                                       # (Nb, 4H)

        sig = jax.nn.sigmoid(z[:, : 3 * H])   # [i | f | o] in one EUP pass
        g_g = jnp.tanh(z[:, 3 * H :])         # [g]
        i_g = sig[:, :H]
        f_g = sig[:, H : 2 * H]
        o_g = sig[:, 2 * H : 3 * H]

        c = f_g * c + i_g * g_g
        h = o_g * jnp.tanh(c)

    hout_ref[...] = h


def lstm_final_hidden(flat_idx, table, whh_fused, *, nb_max=1024):
    """flat_idx: (N, L) int32 -> final hidden state (N, H) float32."""
    N, L = flat_idx.shape
    H, H4 = whh_fused.shape
    NC = table.shape[0]

    # Pad N to a multiple of 8 sublanes; tile with at most nb_max rows/block.
    if N <= nb_max:
        n_pad = _round_up(N, 8)
        nb = n_pad
    else:
        n_pad = _round_up(N, nb_max)
        nb = nb_max
    if n_pad != N:
        # Padded rows use color index 0 (valid); their outputs are sliced off.
        flat_idx = jnp.pad(flat_idx, ((0, n_pad - N), (0, 0)))

    out = pl.pallas_call(
        _lstm_kernel,
        out_shape=jax.ShapeDtypeStruct((n_pad, H), jnp.float32),
        grid_spec=pltpu.PrefetchScalarGridSpec(
            num_scalar_prefetch=0,
            grid=(n_pad // nb,),
            in_specs=[
                pl.BlockSpec((nb, L), lambda i: (i, 0)),
                pl.BlockSpec((NC, H4), lambda i: (0, 0)),
                pl.BlockSpec((H, H4), lambda i: (0, 0)),
            ],
            out_specs=pl.BlockSpec((nb, H), lambda i: (i, 0)),
        ),
        compiler_params=pltpu.CompilerParams(
            dimension_semantics=("parallel",),
        ),
    )(flat_idx, table, whh_fused)
    return out[:N]


# ----------------------------------------------------------------------------
# Parameter init (deterministic, PyTorch-style uniform(-1/sqrt(H), 1/sqrt(H))
# for LSTM, normal(0,1) for embeddings).  Stored per-gate in nn.LSTM order
# (i, f, g, o), already transposed for x @ W.
# ----------------------------------------------------------------------------
def init_params(key):
    k_ce, k_pe, k_wih, k_whh, k_bih, k_bhh = jax.random.split(key, 6)
    bound = 1.0 / jnp.sqrt(HIDDEN_DIM)
    params = {
        "color_emb": jax.random.normal(k_ce, (NUM_COLORS, COLOR_EMB_DIM), jnp.float32),
        "pos_emb": jax.random.normal(k_pe, (NUM_POS, POS_EMB_DIM), jnp.float32),
        "wih": jax.random.uniform(
            k_wih, (4, COLOR_EMB_DIM, HIDDEN_DIM), jnp.float32, -bound, bound
        ),
        "whh": jax.random.uniform(
            k_whh, (4, HIDDEN_DIM, HIDDEN_DIM), jnp.float32, -bound, bound
        ),
        "b_ih": jax.random.uniform(k_bih, (4, HIDDEN_DIM), jnp.float32, -bound, bound),
        "b_hh": jax.random.uniform(k_bhh, (4, HIDDEN_DIM), jnp.float32, -bound, bound),
    }
    return params


def pack_lstm_params(params):
    """Fuse per-gate weights -> (E,4H)/(H,4H) and fold color emb + bias into a
    (NUM_COLORS, 4H) table.  Fused gate order is [i, f, o, g]."""
    H = HIDDEN_DIM
    perm = jnp.array([0, 1, 3, 2])  # i, f, o, g
    wih = jnp.transpose(params["wih"][perm], (1, 0, 2)).reshape(COLOR_EMB_DIM, 4 * H)
    whh = jnp.transpose(params["whh"][perm], (1, 0, 2)).reshape(H, 4 * H)
    b = (params["b_ih"] + params["b_hh"])[perm].reshape(1, 4 * H)
    # Bias is folded here exactly once (one-hot rows sum to 1 in the kernel).
    table = params["color_emb"] @ wih + b  # (NUM_COLORS, 4H)
    return table.astype(jnp.float32), whh.astype(jnp.float32)


# ----------------------------------------------------------------------------
# Forward pass equivalent to world_state_encoder.forward
# ----------------------------------------------------------------------------
def world_state_encoder_forward(X, params):
    B = X.shape[0]

    # beaker_id = pos_embedding([0..6]) repeated over batch -> (B, 7, 20)
    beaker_id = jnp.tile(jnp.arange(NUM_POS, dtype=jnp.int32)[None, :], (B, 1))
    beaker_emb = jnp.take(params["pos_emb"], beaker_id, axis=0)

    # The color-embedding gather + LSTM run inside the Pallas kernel directly
    # on the int32 indices (20x less HBM traffic than feeding f32 embeddings).
    flat_idx = X.reshape(-1, NUM_CHEMICAL_LAYERS).astype(jnp.int32)  # (B*7, L)
    table, whh_fused = pack_lstm_params(params)
    h_final = lstm_final_hidden(flat_idx, table, whh_fused)          # (B*7, H)

    encoded_color = h_final.reshape(B, NUM_POS, HIDDEN_DIM)
    context = jnp.concatenate([beaker_emb, encoded_color], axis=2)   # (B, 7, 30)
    return context.reshape(B, -1)                                    # (B, 210)


# ----------------------------------------------------------------------------
# Pure-JAX reference (original unfused semantics) for correctness check.
# ----------------------------------------------------------------------------
def _forward_ref(X, params):
    B = X.shape[0]
    beaker_id = jnp.tile(jnp.arange(NUM_POS, dtype=jnp.int32)[None, :], (B, 1))
    beaker_emb = jnp.take(params["pos_emb"], beaker_id, axis=0)

    flat_idx = X.reshape(-1, NUM_CHEMICAL_LAYERS)
    xs = jnp.take(params["color_emb"], flat_idx, axis=0)  # (N, L, E)
    N = xs.shape[0]
    wih, whh = params["wih"], params["whh"]
    b = params["b_ih"] + params["b_hh"]
    h = jnp.zeros((N, HIDDEN_DIM), jnp.float32)
    c = jnp.zeros((N, HIDDEN_DIM), jnp.float32)
    for t in range(NUM_CHEMICAL_LAYERS):
        x_t = xs[:, t, :]
        i = jax.nn.sigmoid(x_t @ wih[0] + h @ whh[0] + b[0])
        f = jax.nn.sigmoid(x_t @ wih[1] + h @ whh[1] + b[1])
        g = jnp.tanh(x_t @ wih[2] + h @ whh[2] + b[2])
        o = jax.nn.sigmoid(x_t @ wih[3] + h @ whh[3] + b[3])
        c = f * c + i * g
        h = o * jnp.tanh(c)
    encoded_color = h.reshape(B, NUM_POS, HIDDEN_DIM)
    context = jnp.concatenate([beaker_emb, encoded_color], axis=2)
    return context.reshape(B, -1)


if __name__ == "__main__":
    key = jax.random.PRNGKey(0)
    k_in, k_params = jax.random.split(key)

    B = 2
    # X: (B, NUM_POS, NUM_CHEMICAL_LAYERS) int32 color indices in [0, NUM_COLORS)
    X = jax.random.randint(
        k_in, (B, NUM_POS, NUM_CHEMICAL_LAYERS), 0, NUM_COLORS, dtype=jnp.int32
    )
    params = init_params(k_params)

    context = jax.block_until_ready(world_state_encoder_forward(X, params))
    assert context.shape == (B, NUM_POS * (POS_EMB_DIM + HIDDEN_DIM)), context.shape

    # Correctness check against the pure-JAX unfused reference.
    context_ref = jax.block_until_ready(_forward_ref(X, params))
    assert jnp.allclose(context, context_ref, atol=2e-3, rtol=2e-3), (
        jnp.max(jnp.abs(context - context_ref))
    )

    print("KERNEL_OK")
</pallas_src>

<mosaic_0001>
module attributes {stable_mosaic.version = 11 : i64} {
  func.func @_lstm_kernel(%arg0: i32, %arg1: memref<16x4xi32, #tpu.memory_space<vmem>>, %arg2: memref<7x40xf32, #tpu.memory_space<vmem>>, %arg3: memref<10x40xf32, #tpu.memory_space<vmem>>, %arg4: memref<16x10xf32, #tpu.memory_space<vmem>>) attributes {dimension_semantics = [#tpu.dimension_semantics<parallel>], iteration_bounds = array<i64: 1>, scalar_prefetch = 0 : i64, scratch_operands = 0 : i64, tpu.core_type = #tpu.core_type<tc>, window_params = [{transform_indices = @transform_0, window_bounds = array<i64: 16, 4>}, {pipeline_mode = #tpu.pipeline_mode<synchronous>, transform_indices = @transform_1, window_bounds = array<i64: 7, 40>}, {pipeline_mode = #tpu.pipeline_mode<synchronous>, transform_indices = @transform_2, window_bounds = array<i64: 10, 40>}, {transform_indices = @transform_3, window_bounds = array<i64: 16, 10>}]} {
    %c0 = arith.constant 0 : index
    %c0_0 = arith.constant 0 : index
    %0 = vector.load %arg1[%c0, %c0_0] : memref<16x4xi32, #tpu.memory_space<vmem>>, vector<16x4xi32>
    %c0_1 = arith.constant 0 : index
    %c0_2 = arith.constant 0 : index
    %1 = vector.load %arg2[%c0_1, %c0_2] : memref<7x40xf32, #tpu.memory_space<vmem>>, vector<7x40xf32>
    %c0_3 = arith.constant 0 : index
    %c0_4 = arith.constant 0 : index
    %2 = vector.load %arg3[%c0_3, %c0_4] : memref<10x40xf32, #tpu.memory_space<vmem>>, vector<10x40xf32>
    %cst = arith.constant 0.000000e+00 : f32
    %3 = vector.broadcast %cst : f32 to vector<16x10xf32>
    %cst_5 = arith.constant 0.000000e+00 : f32
    %4 = vector.broadcast %cst_5 : f32 to vector<16x10xf32>
    %5 = tpu.iota {dimensions = array<i32: 1>} : vector<16x7xi32>
    %6 = vector.extract_strided_slice %0 {offsets = [0, 0], sizes = [16, 1], strides = [1, 1]} : vector<16x4xi32> to vector<16x1xi32>
    %7 = vector.broadcast %6 : vector<16x1xi32> to vector<16x7xi32>
    %8 = arith.cmpi eq, %7, %5 : vector<16x7xi32>
    %9 = arith.extui %8 : vector<16x7xi1> to vector<16x7xi32>
    %10 = arith.sitofp %9 : vector<16x7xi32> to vector<16x7xf32>
    %cst_6 = arith.constant dense<0.000000e+00> : vector<16x40xf32>
    %11 = tpu.matmul %10, %1, %cst_6 {dimension_numbers = #tpu.dot_dimension_numbers<[1], [0], [0], [1], [0, 0, 1, 1], [], []>} : vector<16x7xf32>, vector<7x40xf32>, vector<16x40xf32> -> vector<16x40xf32>
    %cst_7 = arith.constant dense<0.000000e+00> : vector<16x40xf32>
    %12 = tpu.matmul %3, %2, %cst_7 {dimension_numbers = #tpu.dot_dimension_numbers<[1], [0], [0], [1], [0, 0, 1, 1], [], []>} : vector<16x10xf32>, vector<10x40xf32>, vector<16x40xf32> -> vector<16x40xf32>
    %13 = arith.addf %11, %12 : vector<16x40xf32>
    %14 = vector.extract_strided_slice %13 {offsets = [0, 0], sizes = [16, 30], strides = [1, 1]} : vector<16x40xf32> to vector<16x30xf32>
    %15 = arith.negf %14 : vector<16x30xf32>
    %16 = math.exp %15 : vector<16x30xf32>
    %cst_8 = arith.constant 1.000000e+00 : f32
    %17 = vector.broadcast %cst_8 : f32 to vector<16x30xf32>
    %18 = arith.addf %17, %16 : vector<16x30xf32>
    %19 = arith.divf %17, %18 : vector<16x30xf32>
    %20 = vector.extract_strided_slice %13 {offsets = [0, 30], sizes = [16, 10], strides = [1, 1]} : vector<16x40xf32> to vector<16x10xf32>
    %21 = math.tanh %20 : vector<16x10xf32>
    %22 = vector.extract_strided_slice %19 {offsets = [0, 0], sizes = [16, 10], strides = [1, 1]} : vector<16x30xf32> to vector<16x10xf32>
    %23 = vector.extract_strided_slice %19 {offsets = [0, 10], sizes = [16, 10], strides = [1, 1]} : vector<16x30xf32> to vector<16x10xf32>
    %24 = vector.extract_strided_slice %19 {offsets = [0, 20], sizes = [16, 10], strides = [1, 1]} : vector<16x30xf32> to vector<16x10xf32>
    %25 = arith.mulf %23, %4 : vector<16x10xf32>
    %26 = arith.mulf %22, %21 : vector<16x10xf32>
    %27 = arith.addf %25, %26 : vector<16x10xf32>
    %28 = math.tanh %27 : vector<16x10xf32>
    %29 = arith.mulf %24, %28 : vector<16x10xf32>
    %30 = vector.extract_strided_slice %0 {offsets = [0, 1], sizes = [16, 1], strides = [1, 1]} : vector<16x4xi32> to vector<16x1xi32>
    %31 = vector.broadcast %30 : vector<16x1xi32> to vector<16x7xi32>
    %32 = arith.cmpi eq, %31, %5 : vector<16x7xi32>
    %33 = arith.extui %32 : vector<16x7xi1> to vector<16x7xi32>
    %34 = arith.sitofp %33 : vector<16x7xi32> to vector<16x7xf32>
    %cst_9 = arith.constant dense<0.000000e+00> : vector<16x40xf32>
    %35 = tpu.matmul %34, %1, %cst_9 {dimension_numbers = #tpu.dot_dimension_numbers<[1], [0], [0], [1], [0, 0, 1, 1], [], []>} : vector<16x7xf32>, vector<7x40xf32>, vector<16x40xf32> -> vector<16x40xf32>
    %cst_10 = arith.constant dense<0.000000e+00> : vector<16x40xf32>
    %36 = tpu.matmul %29, %2, %cst_10 {dimension_numbers = #tpu.dot_dimension_numbers<[1], [0], [0], [1], [0, 0, 1, 1], [], []>} : vector<16x10xf32>, vector<10x40xf32>, vector<16x40xf32> -> vector<16x40xf32>
    %37 = arith.addf %35, %36 : vector<16x40xf32>
    %38 = vector.extract_strided_slice %37 {offsets = [0, 0], sizes = [16, 30], strides = [1, 1]} : vector<16x40xf32> to vector<16x30xf32>
    %39 = arith.negf %38 : vector<16x30xf32>
    %40 = math.exp %39 : vector<16x30xf32>
    %cst_11 = arith.constant 1.000000e+00 : f32
    %41 = vector.broadcast %cst_11 : f32 to vector<16x30xf32>
    %42 = arith.addf %41, %40 : vector<16x30xf32>
    %43 = arith.divf %41, %42 : vector<16x30xf32>
    %44 = vector.extract_strided_slice %37 {offsets = [0, 30], sizes = [16, 10], strides = [1, 1]} : vector<16x40xf32> to vector<16x10xf32>
    %45 = math.tanh %44 : vector<16x10xf32>
    %46 = vector.extract_strided_slice %43 {offsets = [0, 0], sizes = [16, 10], strides = [1, 1]} : vector<16x30xf32> to vector<16x10xf32>
    %47 = vector.extract_strided_slice %43 {offsets = [0, 10], sizes = [16, 10], strides = [1, 1]} : vector<16x30xf32> to vector<16x10xf32>
    %48 = vector.extract_strided_slice %43 {offsets = [0, 20], sizes = [16, 10], strides = [1, 1]} : vector<16x30xf32> to vector<16x10xf32>
    %49 = arith.mulf %47, %27 : vector<16x10xf32>
    %50 = arith.mulf %46, %45 : vector<16x10xf32>
    %51 = arith.addf %49, %50 : vector<16x10xf32>
    %52 = math.tanh %51 : vector<16x10xf32>
    %53 = arith.mulf %48, %52 : vector<16x10xf32>
    %54 = vector.extract_strided_slice %0 {offsets = [0, 2], sizes = [16, 1], strides = [1, 1]} : vector<16x4xi32> to vector<16x1xi32>
    %55 = vector.broadcast %54 : vector<16x1xi32> to vector<16x7xi32>
    %56 = arith.cmpi eq, %55, %5 : vector<16x7xi32>
    %57 = arith.extui %56 : vector<16x7xi1> to vector<16x7xi32>
    %58 = arith.sitofp %57 : vector<16x7xi32> to vector<16x7xf32>
    %cst_12 = arith.constant dense<0.000000e+00> : vector<16x40xf32>
    %59 = tpu.matmul %58, %1, %cst_12 {dimension_numbers = #tpu.dot_dimension_numbers<[1], [0], [0], [1], [0, 0, 1, 1], [], []>} : vector<16x7xf32>, vector<7x40xf32>, vector<16x40xf32> -> vector<16x40xf32>
    %cst_13 = arith.constant dense<0.000000e+00> : vector<16x40xf32>
    %60 = tpu.matmul %53, %2, %cst_13 {dimension_numbers = #tpu.dot_dimension_numbers<[1], [0], [0], [1], [0, 0, 1, 1], [], []>} : vector<16x10xf32>, vector<10x40xf32>, vector<16x40xf32> -> vector<16x40xf32>
    %61 = arith.addf %59, %60 : vector<16x40xf32>
    %62 = vector.extract_strided_slice %61 {offsets = [0, 0], sizes = [16, 30], strides = [1, 1]} : vector<16x40xf32> to vector<16x30xf32>
    %63 = arith.negf %62 : vector<16x30xf32>
    %64 = math.exp %63 : vector<16x30xf32>
    %cst_14 = arith.constant 1.000000e+00 : f32
    %65 = vector.broadcast %cst_14 : f32 to vector<16x30xf32>
    %66 = arith.addf %65, %64 : vector<16x30xf32>
    %67 = arith.divf %65, %66 : vector<16x30xf32>
    %68 = vector.extract_strided_slice %61 {offsets = [0, 30], sizes = [16, 10], strides = [1, 1]} : vector<16x40xf32> to vector<16x10xf32>
    %69 = math.tanh %68 : vector<16x10xf32>
    %70 = vector.extract_strided_slice %67 {offsets = [0, 0], sizes = [16, 10], strides = [1, 1]} : vector<16x30xf32> to vector<16x10xf32>
    %71 = vector.extract_strided_slice %67 {offsets = [0, 10], sizes = [16, 10], strides = [1, 1]} : vector<16x30xf32> to vector<16x10xf32>
    %72 = vector.extract_strided_slice %67 {offsets = [0, 20], sizes = [16, 10], strides = [1, 1]} : vector<16x30xf32> to vector<16x10xf32>
    %73 = arith.mulf %71, %51 : vector<16x10xf32>
    %74 = arith.mulf %70, %69 : vector<16x10xf32>
    %75 = arith.addf %73, %74 : vector<16x10xf32>
    %76 = math.tanh %75 : vector<16x10xf32>
    %77 = arith.mulf %72, %76 : vector<16x10xf32>
    %78 = vector.extract_strided_slice %0 {offsets = [0, 3], sizes = [16, 1], strides = [1, 1]} : vector<16x4xi32> to vector<16x1xi32>
    %79 = vector.broadcast %78 : vector<16x1xi32> to vector<16x7xi32>
    %80 = arith.cmpi eq, %79, %5 : vector<16x7xi32>
    %81 = arith.extui %80 : vector<16x7xi1> to vector<16x7xi32>
    %82 = arith.sitofp %81 : vector<16x7xi32> to vector<16x7xf32>
    %cst_15 = arith.constant dense<0.000000e+00> : vector<16x40xf32>
    %83 = tpu.matmul %82, %1, %cst_15 {dimension_numbers = #tpu.dot_dimension_numbers<[1], [0], [0], [1], [0, 0, 1, 1], [], []>} : vector<16x7xf32>, vector<7x40xf32>, vector<16x40xf32> -> vector<16x40xf32>
    %cst_16 = arith.constant dense<0.000000e+00> : vector<16x40xf32>
    %84 = tpu.matmul %77, %2, %cst_16 {dimension_numbers = #tpu.dot_dimension_numbers<[1], [0], [0], [1], [0, 0, 1, 1], [], []>} : vector<16x10xf32>, vector<10x40xf32>, vector<16x40xf32> -> vector<16x40xf32>
    %85 = arith.addf %83, %84 : vector<16x40xf32>
    %86 = vector.extract_strided_slice %85 {offsets = [0, 0], sizes = [16, 30], strides = [1, 1]} : vector<16x40xf32> to vector<16x30xf32>
    %87 = arith.negf %86 : vector<16x30xf32>
    %88 = math.exp %87 : vector<16x30xf32>
    %cst_17 = arith.constant 1.000000e+00 : f32
    %89 = vector.broadcast %cst_17 : f32 to vector<16x30xf32>
    %90 = arith.addf %89, %88 : vector<16x30xf32>
    %91 = arith.divf %89, %90 : vector<16x30xf32>
    %92 = vector.extract_strided_slice %85 {offsets = [0, 30], sizes = [16, 10], strides = [1, 1]} : vector<16x40xf32> to vector<16x10xf32>
    %93 = math.tanh %92 : vector<16x10xf32>
    %94 = vector.extract_strided_slice %91 {offsets = [0, 0], sizes = [16, 10], strides = [1, 1]} : vector<16x30xf32> to vector<16x10xf32>
    %95 = vector.extract_strided_slice %91 {offsets = [0, 10], sizes = [16, 10], strides = [1, 1]} : vector<16x30xf32> to vector<16x10xf32>
    %96 = vector.extract_strided_slice %91 {offsets = [0, 20], sizes = [16, 10], strides = [1, 1]} : vector<16x30xf32> to vector<16x10xf32>
    %97 = arith.mulf %95, %75 : vector<16x10xf32>
    %98 = arith.mulf %94, %93 : vector<16x10xf32>
    %99 = arith.addf %97, %98 : vector<16x10xf32>
    %100 = math.tanh %99 : vector<16x10xf32>
    %101 = arith.mulf %96, %100 : vector<16x10xf32>
    %c0_18 = arith.constant 0 : index
    %c0_19 = arith.constant 0 : index
    %102 = vector.load %arg4[%c0_18, %c0_19] : memref<16x10xf32, #tpu.memory_space<vmem>>, vector<16x10xf32>
    tpu.vector_store %arg4[%c0_18, %c0_19], %101 {strides = array<i32>} : memref<16x10xf32, #tpu.memory_space<vmem>>, vector<16x10xf32>,
    return
  }
  func.func @transform_0(%arg0: i32) -> (i32, i32) {
    %c0_i32 = arith.constant 0 : i32
    %c0_i32_0 = arith.constant 0 : i32
    return %arg0, %c0_i32 : i32, i32
  }
  func.func @transform_1(%arg0: i32) -> (i32, i32) {
    %c0_i32 = arith.constant 0 : i32
    %c0_i32_0 = arith.constant 0 : i32
    %c0_i32_1 = arith.constant 0 : i32
    return %c0_i32, %c0_i32_0 : i32, i32
  }
  func.func @transform_2(%arg0: i32) -> (i32, i32) {
    %c0_i32 = arith.constant 0 : i32
    %c0_i32_0 = arith.constant 0 : i32
    %c0_i32_1 = arith.constant 0 : i32
    return %c0_i32, %c0_i32_0 : i32, i32
  }
  func.func @transform_3(%arg0: i32) -> (i32, i32) {
    %c0_i32 = arith.constant 0 : i32
    %c0_i32_0 = arith.constant 0 : i32
    return %arg0, %c0_i32 : i32, i32
  }
}

</mosaic_0001>

<bundles_post_ra>
// kernel: tpu_custom_call.1
= control target key start
LH: loop header
LB: loop body
LE: loop exit
PB: predicated region body
PF: predicated region fallthrough
CT: control target
= control target key end

     0   :  { %vm38_vm0 = vcmask 1041408   ;;  %v1208_v2 = vmov 0   ;;  %vm1209_vm1 = vmmov 1   ;;  %v1210_v6 = vmov 0.0   ;;  %s1399_s0 = inlined_call_operand.vmem [shape: s32[16,4], index: 0, kind: input, shape index: {}]   ;;  %s1400_s1 = inlined_call_operand.vmem [shape: f32[7,40], index: 1, kind: input, shape index: {}]   ;;  %s1401_s2 = inlined_call_operand.vmem [shape: f32[10,40], index: 2, kind: input, shape index: {}]   ;;  %s1402_s3 = inlined_call_operand.hbm [shape: f32[16,10], index: 3, kind: output, shape index: {}]  }
   0x1   :  { %v1243_v0 = vld [vmem:[%s1399_s0] sm:$0xff]  ;;  %1113 = vset.pattern.permute.xlu0 %v1208_v2  ;;  %v19_v3 = vld [vmem:[%s1401_s2 + $0x8] sm:$0x3]  ;;  %vm1251_vm2 = vmpackc.low %vm38_vm0, %vm1209_vm1  ;;  %1025 = vmatprep.mubr.f32.mxu0 %v1210_v6 }
   0x2   :  { %v18_v1 = vld [vmem:[%s1401_s2] sm:$0xff]  ;;  %23 = vperm.xlu0 %1113, %v1243_v0  }
   0x3   :  { %v1256_v5 = vpack.c.bf16 %v19_v3, %v18_v1 }
   0x4   :  { %8 = vsyncpa [#allocation3], 0  ;;  %v1262_v7 = vld [vmem:[%s1399_s0 + $0x8] sm:$0xff]  ;;  %v1267_v8 = vld [vmem:[%s1400_s1] sm:$0x7f]  ;;  %vm124_vm3 = vcmask 1046528   ;;  %v20_v9 = vlaneseq }
   0x5   :  { %1071 = vmatprep.subr.msk.bf16.mxu0 %vm1251_vm2, %v1256_v5  ;;  %1077 = vmatprep.subr.msk.bf16.mxu1 %vm1251_vm2, %v1256_v5  ;;  %vm117_vm4 = vcmask 56320   ;;  %s1211_s0 = smov 98   ;;  %s1212_s1 = smov 10   ;;  %v1213_v31 = vmov 1   ;;  %vm34_vm7 = vcmask 80896   ;;  %v1215_v3 = vmov 2  }
   0x6   :  { %1074 = vmatpush3.bf16.msk.msra.mxu0 %vm1251_vm2, %v1256_v5  ;;  %1080 = vmatpush3.bf16.msk.msra.mxu1 %vm1251_vm2, %v1256_v5  ;;  %v1292_v10 = vand.u32 127, %v20_v9  ;;  %s1214_s21 = smov 108   ;;  %s1217_s22 = smov [#allocation2]  }
   0x7   :  { %26 = vperm.xlu0 %1113, %v1262_v7   ;;  %1028 = vmatprep.subr.msk.mxu0 %vm124_vm3, %v1267_v8  ;;  %s944_s23 = sshll.u32 %s1217_s22, 4  ;;  %s945_s23 = int_to_ptr.vmem [resolvable:$true] %s944_s23 }
   0x8   :  { %1040 = vmatprep.subr.msk.mxu1 %vm124_vm3, %v1267_v8  ;;  %1115 = vset.pattern.permute.xlu1 %v1213_v31  ;;  %s1184_s24 = scalar_lea.vmem %s945_s23, 256  ;;  %p1189_p1 = scmp.lt.s32.totalorder %s945_s23, %s945_s23 }
   0x9   :  { %1026 = vmatmul.mubr.f32.vlgmr.msra.gmra.mrb[0].mxu0 %v1210_v6  ;;  %p1185_p0 = scmp.ne.s32.totalorder %s945_s23, %s1184_s24  ;;  %p1190_p2 = scmp.lt.s32.totalorder %s1184_s24, %s1184_s24 }
   0xa   :  { %1029 = vmatpush3.msk.msra.mxu0 %vm124_vm3, %v1267_v8 }
   0xb   :  { %1083 = vmatprep.subr.msk.bf16.mxu0 %vm1251_vm2, %v1256_v5  ;;  %1114 = vset.pattern.permute.xlu0 %v1213_v31  ;;  %p1191_p3 = por %p1190_p2, %p1189_p1 }
   0xd   :  { %p1192_p4 = pnand %p1191_p3, %p1185_p0 }
  0x81   :  { %v24_v11 = vpop.permute.xlu0 %23 }
  0x82   :  { %vm28_vm5 = vcmp.eq.s32.totalorder %v24_v11, %v1292_v10 }
  0x83   :  { %v955_v12 = vsel %vm28_vm5, 1.0, %v1210_v6 }
  0x84   :  { %1030 = vmatprep.mubr.msk.f32.mxu0 %vm117_vm4, %v955_v12 }
  0x86   :  { %v27_v13 = vpop.permute.xlu0 %26 }
  0x87   :  { %vm29_vm6 = vcmp.eq.s32.totalorder %v27_v13, %v1292_v10 }
  0x88   :  { %v956_v14 = vsel %vm29_vm6, 1.0, %v1210_v6 }
  0x89   :  { %1031 = vmatmul.mubr.msk.f32.vlgmr.msra.gmra.mrb[0].mxu0 %vm117_vm4, %v956_v14 }
  0x8a   :  { %1086 = vmatpush3.bf16.msk.msra.mxu0 %vm1251_vm2, %v1256_v5 }
  0x8b   :  { %1052 = vmatprep.subr.msk.mxu0 %vm124_vm3, %v1267_v8 }
 0x15c   :  { %v1032_v15 = vpop.f32.mrb[0].mxu0 }
 0x15d   :  { %v194_v16 = vpop.f32.mrb[1].mxu0  ;;  %v962_v20 = vmul.f32 -1.442695, %v1032_v15 }
 0x15e   :  { %1120 = vtanh.f32 %v194_v16  ;;  %v961_v19 = vmul.f32 -1.442695, %v194_v16 }
 0x15f   :  { %1122 = vtanh.f32 %v1032_v15 }
 0x160   :  { %1124 = vpow2.f32 %v961_v19 }
 0x161   :  { %1126 = vpow2.f32 %v962_v20 }
 0x168   :  { %v1121_v17 = vpop.eup %1120 }
 0x169   :  { %221 = vrot.lane.b32.xlu1 %v1121_v17, %s1211_s0  ;;  %v1123_v18 = vpop.eup %1122 }
 0x16a   :  { %v1125_v21 = vpop.eup %1124 }
 0x16b   :  { %v209_v22 = vadd.f32 1.0, %v1125_v21  ;;  %v1127_v23 = vpop.eup %1126 }
 0x16c   :  { %v210_v24 = vadd.f32 1.0, %v1127_v23 }
 0x16d   :  { %223 = vrot.lane.b32.xlu1 %v1123_v18, %s1211_s0  ;;  %1128 = vrcp.f32 %v209_v22 }
 0x16e   :  { %1130 = vrcp.f32 %v210_v24 }
 0x177   :  { %v1129_v25 = vpop.eup %1128 }
 0x178   :  { %v1131_v28 = vpop.eup %1130  ;;  %v217_v32 = vmul.f32 0.0, %v1129_v25 }
 0x179   :  { %v218_v35 = vmul.f32 0.0, %v1131_v28 }
 0x1db   :  { %v222_v26 = vpop.permute.xlu1 %221 }
 0x1dc   :  { %v227_v27 = vmul.f32 %v1129_v25, %v222_v26 }
 0x1de   :  { %231 = vrot.lane.b32.xlu0 %v227_v27, %s1212_s1 }
 0x1df   :  { %v224_v29 = vpop.permute.xlu1 %223 }
 0x1e0   :  { %v228_v30 = vmul.f32 %v1131_v28, %v224_v29 }
 0x1e2   :  { %233 = vrot.lane.b32.xlu1 %v228_v30, %s1212_s1 }
 0x250   :  { %v232_v33 = vpop.permute.xlu0 %231 }
 0x251   :  { %v1309_v34 = vadd.f32 %v232_v33, %v217_v32 }
 0x253   :  { %1132 = vtanh.f32 %v1309_v34 }
 0x254   :  { %v234_v36 = vpop.permute.xlu1 %233 }
 0x255   :  { %v238_v37 = vadd.f32 %v234_v36, %v218_v35 }
 0x257   :  { %1134 = vtanh.f32 %v238_v37 }
 0x25d   :  { %v1133_v38 = vpop.eup %1132 }
 0x25e   :  { %243 = vrot.lane.b32.xlu0 %v1133_v38, %s1212_s1 }
 0x261   :  { %v1135_v39 = vpop.eup %1134 }
 0x262   :  { %245 = vrot.lane.b32.xlu1 %v1135_v39, %s1212_s1  ;;  %252 = vperm.xlu0 %1114, %v1243_v0  }
 0x266   :  { %255 = vperm.xlu1 %1115, %v1262_v7   ;;  %1117 = vset.pattern.permute.xlu0 %v1215_v3 }
 0x26a   :  { %1116 = vset.pattern.permute.xlu1 %v1215_v3 }
 0x2d0   :  { %v244_v40 = vpop.permute.xlu0 %243 }
 0x2d1   :  { %v249_v41 = vmul.f32 %v1129_v25, %v244_v40 }
 0x2d3   :  { %265 = vrot.lane.b32.xlu1 %v249_v41, %s1214_s21 }
 0x2d4   :  { %v246_v42 = vpop.permute.xlu1 %245 }
 0x2d5   :  { %v250_v43 = vmul.f32 %v1131_v28, %v246_v42  ;;  %v1216_v42 = vmov 3  }
 0x2d7   :  { %267 = vrot.lane.b32.xlu0 %v250_v43, %s1214_s21 }
 0x2e1   :  { %v253_v45 = vpop.permute.xlu0 %252 }
 0x2e2   :  { %vm257_vm8 = vcmp.eq.s32.totalorder %v253_v45, %v1292_v10 }
 0x2e3   :  { %v963_v48 = vsel %vm257_vm8, 1.0, %v1210_v6 }
 0x2e5   :  { %v256_v44 = vpop.permute.xlu1 %255 }
 0x2e6   :  { %vm258_vm9 = vcmp.eq.s32.totalorder %v256_v44, %v1292_v10 }
 0x2e7   :  { %v964_v49 = vsel %vm258_vm9, 1.0, %v1210_v6 }
 0x345   :  { %v266_v46 = vpop.permute.xlu1 %265 }
 0x346   :  { %1037 = vmatprep.mubr.msk.f32.mxu1 %vm34_vm7, %v266_v46 }
 0x349   :  { %v268_v47 = vpop.permute.xlu0 %267 }
 0x34a   :  { %1038 = vmatmul.mubr.msk.f32.vlgmr.msra.gmra.mrb[0].mxu1 %vm34_vm7, %v268_v47 }
 0x34b   :  { %1041 = vmatpush3.msk.msra.mxu1 %vm124_vm3, %v1267_v8  ;;  %1042 = vmatprep.mubr.msk.f32.mxu1 %vm117_vm4, %v963_v48 }
 0x34c   :  { %1089 = vmatprep.subr.msk.bf16.mxu1 %vm1251_vm2, %v1256_v5 }
 0x352   :  { %1043 = vmatmul.mubr.msk.f32.vlgmr.msra.gmra.mrb[0].mxu1 %vm117_vm4, %v964_v49 }
 0x353   :  { %1092 = vmatpush3.bf16.msk.msra.mxu1 %vm1251_vm2, %v1256_v5 }
 0x354   :  { %1064 = vmatprep.subr.msk.mxu1 %vm124_vm3, %v1267_v8 }
 0x425   :  { %v1044_v50 = vpop.f32.mrb[0].mxu1 }
 0x426   :  { %1136 = vtanh.f32 %v1044_v50  ;;  %v420_v51 = vpop.f32.mrb[1].mxu1  ;;  %v972_v54 = vmul.f32 -1.442695, %v1044_v50 }
 0x427   :  { %1138 = vtanh.f32 %v420_v51  ;;  %v971_v55 = vmul.f32 -1.442695, %v420_v51 }
 0x428   :  { %1140 = vpow2.f32 %v972_v54 }
 0x429   :  { %1142 = vpow2.f32 %v971_v55 }
 0x430   :  { %v1137_v52 = vpop.eup %1136 }
 0x431   :  { %v1139_v53 = vpop.eup %1138  ;;  %449 = vrot.lane.b32.xlu0 %v1137_v52, %s1211_s0 }
 0x432   :  { %447 = vrot.lane.b32.xlu1 %v1139_v53, %s1211_s0  ;;  %v1141_v56 = vpop.eup %1140 }
 0x433   :  { %v1143_v57 = vpop.eup %1142  ;;  %v436_v58 = vadd.f32 1.0, %v1141_v56 }
 0x434   :  { %v435_v59 = vadd.f32 1.0, %v1143_v57 }
 0x435   :  { %1144 = vrcp.f32 %v436_v58 }
 0x436   :  { %1146 = vrcp.f32 %v435_v59 }
 0x43f   :  { %v1145_v60 = vpop.eup %1144 }
 0x440   :  { %v1147_v62 = vpop.eup %1146  ;;  %v444_v4 = vmul.f32 %v1145_v60, %v238_v37 }
 0x441   :  { %v443_v9 = vmul.f32 %v1147_v62, %v1309_v34 }
 0x4a3   :  { %v450_v61 = vpop.permute.xlu0 %449 }
 0x4a4   :  { %v454_v63 = vmul.f32 %v1145_v60, %v450_v61  ;;  %v448_v1 = vpop.permute.xlu1 %447 }
 0x4a5   :  { %v453_v2 = vmul.f32 %v1147_v62, %v448_v1 }
 0x4a6   :  { %459 = vrot.lane.b32.xlu0 %v454_v63, %s1212_s1 }
 0x4a7   :  { %457 = vrot.lane.b32.xlu1 %v453_v2, %s1212_s1 }
 0x518   :  { %v460_v5 = vpop.permute.xlu0 %459 }
 0x519   :  { %v464_v11 = vadd.f32 %v460_v5, %v444_v4  ;;  %v458_v12 = vpop.permute.xlu1 %457 }
 0x51a   :  { %v463_v13 = vadd.f32 %v458_v12, %v443_v9 }
 0x51b   :  { %1148 = vtanh.f32 %v464_v11 }
 0x51c   :  { %1150 = vtanh.f32 %v463_v13 }
 0x525   :  { %v1149_v14 = vpop.eup %1148 }
 0x526   :  { %v1151_v15 = vpop.eup %1150  ;;  %471 = vrot.lane.b32.xlu0 %v1149_v14, %s1212_s1 }
 0x527   :  { %469 = vrot.lane.b32.xlu1 %v1151_v15, %s1212_s1 }
 0x52a   :  { %481 = vperm.xlu0 %1117, %v1262_v7  }
 0x52b   :  { %478 = vperm.xlu1 %1116, %v1243_v0  }
 0x52e   :  { %1118 = vset.pattern.permute.xlu0 %v1216_v42 }
 0x52f   :  { %1119 = vset.pattern.permute.xlu1 %v1216_v42 }
 0x598   :  { %v472_v18 = vpop.permute.xlu0 %471 }
 0x599   :  { %v470_v16 = vpop.permute.xlu1 %469  ;;  %v476_v19 = vmul.f32 %v1145_v60, %v472_v18 }
 0x59a   :  { %v475_v17 = vmul.f32 %v1147_v62, %v470_v16 }
 0x59c   :  { %491 = vrot.lane.b32.xlu1 %v475_v17, %s1214_s21 }
 0x5a0   :  { %493 = vrot.lane.b32.xlu1 %v476_v19, %s1214_s21 }
 0x5a9   :  { %v482_v23 = vpop.permute.xlu0 %481 }
 0x5aa   :  { %v479_v20 = vpop.permute.xlu1 %478  ;;  %vm484_vm11 = vcmp.eq.s32.totalorder %v482_v23, %v1292_v10 }
 0x5ab   :  { %vm483_vm10 = vcmp.eq.s32.totalorder %v479_v20, %v1292_v10  ;;  %v974_v25 = vsel %vm484_vm11, 1.0, %v1210_v6 }
 0x5ac   :  { %v973_v24 = vsel %vm483_vm10, 1.0, %v1210_v6 }
 0x60e   :  { %v492_v21 = vpop.permute.xlu1 %491 }
 0x60f   :  { %1049 = vmatprep.mubr.msk.f32.mxu0 %vm34_vm7, %v492_v21 }
 0x612   :  { %v494_v22 = vpop.permute.xlu1 %493 }
 0x613   :  { %1050 = vmatmul.mubr.msk.f32.vlgmr.msra.gmra.mrb[2].mxu0 %vm34_vm7, %v494_v22 }
 0x614   :  { %1053 = vmatpush3.msk.msra.mxu0 %vm124_vm3, %v1267_v8  ;;  %1054 = vmatprep.mubr.msk.f32.mxu0 %vm117_vm4, %v973_v24 }
 0x61b   :  { %1055 = vmatmul.mubr.msk.f32.vlgmr.msra.gmra.mrb[2].mxu0 %vm117_vm4, %v974_v25 }
 0x6ee   :  { %v1056_v26 = vpop.f32.mrb[2].mxu0 }
 0x6ef   :  { %1152 = vtanh.f32 %v1056_v26  ;;  %v646_v27 = vpop.f32.mrb[3].mxu0  ;;  %v982_v30 = vmul.f32 -1.442695, %v1056_v26 }
 0x6f0   :  { %1154 = vtanh.f32 %v646_v27  ;;  %v981_v31 = vmul.f32 -1.442695, %v646_v27 }
 0x6f1   :  { %1156 = vpow2.f32 %v982_v30 }
 0x6f2   :  { %1158 = vpow2.f32 %v981_v31 }
 0x6f9   :  { %v1153_v28 = vpop.eup %1152 }
 0x6fa   :  { %v1155_v29 = vpop.eup %1154  ;;  %675 = vrot.lane.b32.xlu1 %v1153_v28, %s1211_s0 }
 0x6fb   :  { %673 = vrot.lane.b32.xlu0 %v1155_v29, %s1211_s0  ;;  %v1157_v32 = vpop.eup %1156 }
 0x6fc   :  { %v1159_v33 = vpop.eup %1158  ;;  %v662_v34 = vadd.f32 1.0, %v1157_v32 }
 0x6fd   :  { %v661_v35 = vadd.f32 1.0, %v1159_v33 }
 0x6fe   :  { %1160 = vrcp.f32 %v662_v34 }
 0x6ff   :  { %1162 = vrcp.f32 %v661_v35 }
 0x708   :  { %v1161_v36 = vpop.eup %1160 }
 0x709   :  { %v1163_v38 = vpop.eup %1162  ;;  %v670_v43 = vmul.f32 %v1161_v36, %v464_v11 }
 0x70a   :  { %v669_v45 = vmul.f32 %v1163_v38, %v463_v13 }
 0x76c   :  { %v676_v37 = vpop.permute.xlu1 %675 }
 0x76d   :  { %v680_v39 = vmul.f32 %v1161_v36, %v676_v37  ;;  %v674_v40 = vpop.permute.xlu0 %673 }
 0x76e   :  { %v679_v41 = vmul.f32 %v1163_v38, %v674_v40 }
 0x76f   :  { %685 = vrot.lane.b32.xlu1 %v680_v39, %s1212_s1 }
 0x770   :  { %683 = vrot.lane.b32.xlu0 %v679_v41, %s1212_s1 }
 0x7e1   :  { %v686_v44 = vpop.permute.xlu1 %685 }
 0x7e2   :  { %v690_v46 = vadd.f32 %v686_v44, %v670_v43  ;;  %v684_v47 = vpop.permute.xlu0 %683 }
 0x7e3   :  { %v689_v48 = vadd.f32 %v684_v47, %v669_v45 }
 0x7e4   :  { %1164 = vtanh.f32 %v690_v46 }
 0x7e5   :  { %1166 = vtanh.f32 %v689_v48 }
 0x7ee   :  { %v1165_v49 = vpop.eup %1164 }
 0x7ef   :  { %v1167_v50 = vpop.eup %1166  ;;  %697 = vrot.lane.b32.xlu1 %v1165_v49, %s1212_s1 }
 0x7f0   :  { %695 = vrot.lane.b32.xlu0 %v1167_v50, %s1212_s1 }
 0x7f3   :  { %707 = vperm.xlu1 %1119, %v1262_v7  }
 0x7f4   :  { %704 = vperm.xlu0 %1118, %v1243_v0  }
 0x861   :  { %v698_v51 = vpop.permute.xlu1 %697 }
 0x862   :  { %v702_v52 = vmul.f32 %v1161_v36, %v698_v51  ;;  %v696_v53 = vpop.permute.xlu0 %695 }
 0x863   :  { %v701_v54 = vmul.f32 %v1163_v38, %v696_v53 }
 0x864   :  { %719 = vrot.lane.b32.xlu0 %v702_v52, %s1214_s21 }
 0x865   :  { %717 = vrot.lane.b32.xlu1 %v701_v54, %s1214_s21 }
 0x872   :  { %v708_v55 = vpop.permute.xlu1 %707 }
 0x873   :  { %v705_v56 = vpop.permute.xlu0 %704  ;;  %vm710_vm13 = vcmp.eq.s32.totalorder %v708_v55, %v1292_v10 }
 0x874   :  { %vm709_vm12 = vcmp.eq.s32.totalorder %v705_v56, %v1292_v10  ;;  %v984_v0 = vsel %vm710_vm13, 1.0, %v1210_v6 }
 0x875   :  { %v983_v7 = vsel %vm709_vm12, 1.0, %v1210_v6 }
 0x8d6   :  { %v720_v58 = vpop.permute.xlu0 %719 }
 0x8d7   :  { %v718_v57 = vpop.permute.xlu1 %717 }
 0x8d8   :  { %1061 = vmatprep.mubr.msk.f32.mxu1 %vm34_vm7, %v718_v57 }
 0x8d9   :  { %1062 = vmatmul.mubr.msk.f32.vlgmr.msra.gmra.mrb[2].mxu1 %vm34_vm7, %v720_v58 }
 0x8da   :  { %1065 = vmatpush3.msk.msra.mxu1 %vm124_vm3, %v1267_v8  ;;  %1066 = vmatprep.mubr.msk.f32.mxu1 %vm117_vm4, %v983_v7 }
 0x8e1   :  { %1067 = vmatmul.mubr.msk.f32.vlgmr.msra.gmra.mrb[2].mxu1 %vm117_vm4, %v984_v0 }
 0x9b4   :  { %v1068_v59 = vpop.f32.mrb[2].mxu1 }
 0x9b5   :  { %1168 = vtanh.f32 %v1068_v59  ;;  %v872_v60 = vpop.f32.mrb[3].mxu1  ;;  %v992_v63 = vmul.f32 -1.442695, %v1068_v59 }
 0x9b6   :  { %1170 = vtanh.f32 %v872_v60  ;;  %v991_v8 = vmul.f32 -1.442695, %v872_v60 }
 0x9b7   :  { %1172 = vpow2.f32 %v992_v63 }
 0x9b8   :  { %1174 = vpow2.f32 %v991_v8 }
 0x9bf   :  { %v1169_v61 = vpop.eup %1168 }
 0x9c0   :  { %v1171_v62 = vpop.eup %1170  ;;  %901 = vrot.lane.b32.xlu0 %v1169_v61, %s1211_s0 }
 0x9c1   :  { %899 = vrot.lane.b32.xlu1 %v1171_v62, %s1211_s0  ;;  %v1173_v1 = vpop.eup %1172 }
 0x9c2   :  { %v1175_v10 = vpop.eup %1174  ;;  %v888_v2 = vadd.f32 1.0, %v1173_v1 }
 0x9c3   :  { %v887_v6 = vadd.f32 1.0, %v1175_v10 }
 0x9c4   :  { %1176 = vrcp.f32 %v888_v2 }
 0x9c5   :  { %1178 = vrcp.f32 %v887_v6 }
 0x9ce   :  { %v1177_v3 = vpop.eup %1176 }
 0x9cf   :  { %v1179_v5 = vpop.eup %1178  ;;  %v896_v13 = vmul.f32 %v1177_v3, %v690_v46 }
 0x9d0   :  { %v895_v15 = vmul.f32 %v1179_v5, %v689_v48 }
 0xa32   :  { %v902_v4 = vpop.permute.xlu0 %901 }
 0xa33   :  { %v906_v9 = vmul.f32 %v1177_v3, %v902_v4  ;;  %v900_v11 = vpop.permute.xlu1 %899 }
 0xa34   :  { %v905_v12 = vmul.f32 %v1179_v5, %v900_v11 }
 0xa35   :  { %911 = vrot.lane.b32.xlu0 %v906_v9, %s1212_s1 }
 0xa36   :  { %909 = vrot.lane.b32.xlu1 %v905_v12, %s1212_s1 }
 0xaa7   :  { %v912_v14 = vpop.permute.xlu0 %911 }
 0xaa8   :  { %v916_v16 = vadd.f32 %v912_v14, %v896_v13  ;;  %v910_v17 = vpop.permute.xlu1 %909 }
 0xaa9   :  { %v915_v18 = vadd.f32 %v910_v17, %v895_v15 }
 0xaaa   :  { %1180 = vtanh.f32 %v916_v16 }
 0xaab   :  { %1182 = vtanh.f32 %v915_v18 }
 0xab4   :  { %v1181_v19 = vpop.eup %1180 }
 0xab5   :  { %v1183_v20 = vpop.eup %1182  ;;  %923 = vrot.lane.b32.xlu0 %v1181_v19, %s1212_s1 }
 0xab6   :  { %921 = vrot.lane.b32.xlu1 %v1183_v20, %s1212_s1 }
 0xb27   :  { %v924_v21 = vpop.permute.xlu0 %923 }
 0xb28   :  { %v928_v22 = vmul.f32 %v1177_v3, %v924_v21  ;;  %v922_v23 = vpop.permute.xlu1 %921 }
 0xb29   :  { %v927_v24 = vmul.f32 %v1179_v5, %v922_v23 }
 0xb2a   :  { %933 = vrot.lane.b32.xlu0 %v928_v22, %s1214_s21 }
 0xb2b   :  { %931 = vrot.lane.b32.xlu1 %v927_v24, %s1214_s21 }
 0xb9c   :  { %v934_v25 = vpop.permute.xlu0 %933 }
 0xb9d   :  { %938 = vst.msk [vmem:[#allocation2 + $0x8] sm:$0xff] %vm34_vm7, %v934_v25  ;;  %v932_v26 = vpop.permute.xlu1 %931 }
 0xb9e   :  { %937 = vst.msk [vmem:[#allocation2] sm:$0xff] %vm34_vm7, %v932_v26 }
 0xb9f   :  { %1195 = shalt.err (!%p1192_p4)
}
 0xba0   :  { %s1196_s27 = scalar_lea.hbm %s1402_s3, 256 }
 0xba1   :  { %p1197_p5 = scmp.ne.s32.totalorder %s1402_s3, %s1196_s27  ;;  %p1200_p6 = scmp.lt.u32.totalorder %s1196_s27, %s1402_s3 }
 0xba3   :  { %p1202_p7 = pnand %p1200_p6, %p1197_p5 }
 0xba5   :  { %1205 = shalt.err (!%p1202_p7)
}
 0xba6   :  { %s1218_s5 = smov 128   ;;  %s1219_s6 = smov 8  }
 0xba7   :  { %950 = dma.vmem_to_hbm [thread:$0]  %s945_s23, 256, %s1402_s3, [#allocation3], %s1218_s5, %s1218_s5, %s1219_s6  }
 0xba8   :  { %1206 = dma.done.wait [#allocation3], 256  }
 0xba9   :  { %1207 = vsyncadd [#allocation3], 4294967040 }
 0xbaa   :  { %954 = vsyncpa [#allocation3], 1 }

</bundles_post_ra>
